<compile_context>
chip_gen: v6e
topology: v6e:2x2x1
jax: 0.10.0
libtpu: 0.0.40
codegen_flags: <defaults>
</compile_context>

<pallas_src>
import functools

import jax
import jax.numpy as jnp
from jax import lax
from jax.experimental import pallas as pl
from jax.experimental.pallas import tpu as pltpu


def _layer_norm_kernel(x_ref, gamma_ref, beta_ref, o_ref, *,
                       eps, d_valid, d_padded, approx_recip):
    # x_ref: (tm, Dp), gamma_ref/beta_ref: (1, Dp), o_ref: (tm, Dp)
    x = x_ref[...].astype(jnp.float32)

    if d_padded != d_valid:
        # The wrapper zero-pads the feature axis, so the row sum is already
        # exact; only `centered` needs masking so padded lanes don't pollute
        # the variance. Output padding columns are sliced off in the wrapper.
        mask = lax.broadcasted_iota(jnp.int32, x.shape, x.ndim - 1) < d_valid
        mean = jnp.sum(x, axis=-1, keepdims=True) * (1.0 / d_valid)
        centered = jnp.where(mask, x - mean, 0.0)
    else:
        mean = jnp.sum(x, axis=-1, keepdims=True) * (1.0 / d_valid)
        centered = x - mean

    sq_sum = jnp.sum(centered * centered, axis=-1, keepdims=True)
    if d_valid > 1:
        var = sq_sum * (1.0 / (d_valid - 1))   # torch.std: unbiased (ddof=1)
    else:
        var = sq_sum / 0.0                     # D == 1 degenerate -> NaN (same as torch)
    inv = pl.reciprocal(jnp.sqrt(var) + eps, approx=approx_recip)

    # Fused affine: only `x` and `centered` are long-lived tile-sized f32 temps.
    y = (gamma_ref[...].astype(jnp.float32) * (centered * inv)
         + beta_ref[...].astype(jnp.float32))
    o_ref[...] = y.astype(o_ref.dtype)


def _vmem_limit_bytes():
    cap = 128 * 1024 * 1024
    try:
        info = pltpu.get_tpu_info()
        cap = int(getattr(info, "vmem_capacity_bytes", cap))
    except Exception:
        pass
    # Leave headroom for Mosaic-internal scratch (v7x only has 64 MiB total).
    return int(min(0.70 * cap, 96 * 1024 * 1024))


def _choose_block_rows(m, d_padded, in_itemsize, out_itemsize, vmem_limit):
    # Per-row VMEM footprint: double-buffered input + output tiles plus ~2
    # tile-sized f32 intermediates materialized inside the kernel body.
    bytes_per_row = d_padded * (2 * in_itemsize + 2 * out_itemsize + 2 * 4)
    budget = int(0.8 * vmem_limit)
    tm = budget // max(bytes_per_row, 1)
    tm = min(tm, 1024)                         # diminishing returns beyond ~1k rows
    if m >= 32:
        # Keep >= ~4 grid steps: gives the DMA/compute pipeline depth and lets
        # both v7x TensorCores shard the "parallel" row axis.
        tm = min(tm, max(8, ((m // 4) + 7) // 8 * 8))
    tm = max(8, (tm // 8) * 8)                 # sublane-aligned
    if tm >= m:
        return m                               # full-extent block is always legal
    return tm


def layer_norm(x, gamma, beta, *, eps=1e-6):
    """LayerNorm over the last axis of x (any leading shape). gamma/beta: (D,)."""
    orig_shape = x.shape
    d = orig_shape[-1]
    x2 = x.reshape(-1, d)
    m = x2.shape[0]

    # Lane-dense feature axis: pad D to a multiple of 128 when D > 128 so the
    # output stores are unmasked. For D <= 128 padding would inflate HBM
    # traffic of this mem-bound kernel, so keep the full-extent block instead.
    if d > 128 and d % 128 != 0:
        dp = ((d + 127) // 128) * 128
    else:
        dp = d

    gamma2 = gamma.reshape(1, d)
    beta2 = beta.reshape(1, d)
    if dp != d:
        x2 = jnp.pad(x2, ((0, 0), (0, dp - d)))
        gamma2 = jnp.pad(gamma2, ((0, 0), (0, dp - d)))
        beta2 = jnp.pad(beta2, ((0, 0), (0, dp - d)))

    in_itemsize = jnp.dtype(x.dtype).itemsize
    out_itemsize = in_itemsize
    vmem_limit = _vmem_limit_bytes()
    tm = _choose_block_rows(m, dp, in_itemsize, out_itemsize, vmem_limit)
    grid = (pl.cdiv(m, tm),)

    approx_recip = x.dtype in (jnp.bfloat16, jnp.float16)

    kernel = functools.partial(
        _layer_norm_kernel, eps=float(eps), d_valid=int(d), d_padded=int(dp),
        approx_recip=bool(approx_recip))

    cost = pl.CostEstimate(
        flops=8 * m * d,
        transcendentals=2 * m,                               # sqrt + recip per row
        bytes_accessed=m * d * (in_itemsize + out_itemsize) + 2 * d * 4,
    )

    out = pl.pallas_call(
        kernel,
        out_shape=jax.ShapeDtypeStruct((m, dp), x.dtype),
        grid_spec=pltpu.PrefetchScalarGridSpec(
            num_scalar_prefetch=0,
            grid=grid,
            in_specs=[
                pl.BlockSpec((tm, dp), lambda i: (i, 0)),    # x row tile
                pl.BlockSpec((1, dp), lambda i: (0, 0)),     # gamma (resident)
                pl.BlockSpec((1, dp), lambda i: (0, 0)),     # beta  (resident)
            ],
            out_specs=pl.BlockSpec((tm, dp), lambda i: (i, 0)),
        ),
        compiler_params=pltpu.CompilerParams(
            dimension_semantics=("parallel",),
            vmem_limit_bytes=vmem_limit,
        ),
        cost_estimate=cost,
    )(x2, gamma2, beta2)

    if dp != d:
        out = out[:, :d]
    return out.reshape(orig_shape)


def _reference(x, gamma, beta, eps):
    mean = jnp.mean(x, axis=-1, keepdims=True)
    std = jnp.std(x, axis=-1, keepdims=True, ddof=1)  # matches torch.std (unbiased)
    return gamma * (x - mean) / (std + eps) + beta


def init_params(d_hid):
    # Mirrors the PyTorch module: gamma = ones, beta = zeros.
    return jnp.ones((d_hid,), jnp.float32), jnp.zeros((d_hid,), jnp.float32)


if __name__ == "__main__":
    key = jax.random.PRNGKey(0)
    k1, k2, k3, k4, k5 = jax.random.split(key, 5)
    eps = 1e-6

    # Case 1: small lane-dense shape (batch=2, seq=8, d_hid=128), grid=(1,).
    x1 = jax.random.normal(k1, (2, 8, 128), dtype=jnp.float32)
    g1, b1 = init_params(128)
    g1, b1 = g1 * 1.5, b1 + 0.25                     # non-trivial affine
    y1 = layer_norm(x1, g1, b1, eps=eps)
    jax.block_until_ready(y1)
    assert y1.shape == x1.shape
    assert jnp.allclose(y1, _reference(x1, g1, b1, eps), atol=1e-5, rtol=1e-5)

    # Case 2: multiple row tiles (M=512 -> >=4 grid steps).
    x2 = jax.random.normal(k2, (4, 128, 256), dtype=jnp.float32)
    g2, b2 = init_params(256)
    y2 = layer_norm(x2, g2, b2, eps=eps)
    jax.block_until_ready(y2)
    assert jnp.allclose(y2, _reference(x2, g2, b2, eps), atol=1e-5, rtol=1e-5)

    # Case 3: D not a multiple of 128 -> padded feature axis + masked variance.
    x3 = jax.random.normal(k3, (2, 16, 192), dtype=jnp.float32)
    g3 = jax.random.normal(k4, (192,), dtype=jnp.float32)
    b3 = jnp.full((192,), 0.1, dtype=jnp.float32)
    y3 = layer_norm(x3, g3, b3, eps=eps)
    jax.block_until_ready(y3)
    assert jnp.allclose(y3, _reference(x3, g3, b3, eps), atol=1e-5, rtol=1e-5)

    # Case 4: bf16 input (approx reciprocal path), compared in f32 with loose tol.
    x4 = jax.random.normal(k5, (2, 32, 128), dtype=jnp.float32).astype(jnp.bfloat16)
    g4, b4 = init_params(128)
    y4 = layer_norm(x4, g4, b4, eps=eps)
    jax.block_until_ready(y4)
    ref4 = _reference(x4.astype(jnp.float32), g4, b4, eps)
    assert jnp.allclose(y4.astype(jnp.float32), ref4, atol=5e-2, rtol=5e-2)

    print("KERNEL_OK")
</pallas_src>

<mosaic_0001>
module attributes {stable_mosaic.version = 11 : i64} {
  func.func @_layer_norm_kernel(%arg0: i32, %arg1: memref<16x128xf32, #tpu.memory_space<vmem>>, %arg2: memref<1x128xf32, #tpu.memory_space<vmem>>, %arg3: memref<1x128xf32, #tpu.memory_space<vmem>>, %arg4: memref<16x128xf32, #tpu.memory_space<vmem>>) attributes {dimension_semantics = [#tpu.dimension_semantics<parallel>], iteration_bounds = array<i64: 1>, scalar_prefetch = 0 : i64, scratch_operands = 0 : i64, tpu.core_type = #tpu.core_type<tc>, window_params = [{transform_indices = @transform_0, window_bounds = array<i64: 16, 128>}, {pipeline_mode = #tpu.pipeline_mode<synchronous>, transform_indices = @transform_1, window_bounds = array<i64: 1, 128>}, {pipeline_mode = #tpu.pipeline_mode<synchronous>, transform_indices = @transform_2, window_bounds = array<i64: 1, 128>}, {transform_indices = @transform_3, window_bounds = array<i64: 16, 128>}]} {
    %c0 = arith.constant 0 : index
    %c0_0 = arith.constant 0 : index
    %0 = vector.load %arg1[%c0, %c0_0] : memref<16x128xf32, #tpu.memory_space<vmem>>, vector<16x128xf32>
    %cst = arith.constant dense<0.000000e+00> : vector<16xf32>
    %1 = vector.multi_reduction <add>, %0, %cst [1] : vector<16x128xf32> to vector<16xf32>
    %2 = vector.shape_cast %1 : vector<16xf32> to vector<16x1xf32>
    %cst_1 = arith.constant 7.812500e-03 : f32
    %3 = vector.broadcast %cst_1 : f32 to vector<16x1xf32>
    %4 = arith.mulf %2, %3 : vector<16x1xf32>
    %5 = vector.broadcast %4 : vector<16x1xf32> to vector<16x128xf32>
    %6 = arith.subf %0, %5 : vector<16x128xf32>
    %7 = arith.mulf %6, %6 : vector<16x128xf32>
    %cst_2 = arith.constant dense<0.000000e+00> : vector<16xf32>
    %8 = vector.multi_reduction <add>, %7, %cst_2 [1] : vector<16x128xf32> to vector<16xf32>
    %9 = vector.shape_cast %8 : vector<16xf32> to vector<16x1xf32>
    %cst_3 = arith.constant 0.00787401571 : f32
    %10 = vector.broadcast %cst_3 : f32 to vector<16x1xf32>
    %11 = arith.mulf %9, %10 : vector<16x1xf32>
    %12 = math.sqrt %11 : vector<16x1xf32>
    %cst_4 = arith.constant 9.99999997E-7 : f32
    %13 = vector.broadcast %cst_4 : f32 to vector<16x1xf32>
    %14 = arith.addf %12, %13 : vector<16x1xf32>
    %15 = tpu.reciprocal %14 : vector<16x1xf32> -> vector<16x1xf32>
    %c0_5 = arith.constant 0 : index
    %c0_6 = arith.constant 0 : index
    %16 = vector.load %arg2[%c0_5, %c0_6] : memref<1x128xf32, #tpu.memory_space<vmem>>, vector<1x128xf32>
    %17 = vector.broadcast %15 : vector<16x1xf32> to vector<16x128xf32>
    %18 = arith.mulf %6, %17 : vector<16x128xf32>
    %19 = vector.broadcast %16 : vector<1x128xf32> to vector<16x128xf32>
    %20 = arith.mulf %19, %18 : vector<16x128xf32>
    %c0_7 = arith.constant 0 : index
    %c0_8 = arith.constant 0 : index
    %21 = vector.load %arg3[%c0_7, %c0_8] : memref<1x128xf32, #tpu.memory_space<vmem>>, vector<1x128xf32>
    %22 = vector.broadcast %21 : vector<1x128xf32> to vector<16x128xf32>
    %23 = arith.addf %20, %22 : vector<16x128xf32>
    %c0_9 = arith.constant 0 : index
    %c0_10 = arith.constant 0 : index
    %24 = vector.load %arg4[%c0_9, %c0_10] : memref<16x128xf32, #tpu.memory_space<vmem>>, vector<16x128xf32>
    tpu.vector_store %arg4[%c0_9, %c0_10], %23 {strides = array<i32>} : memref<16x128xf32, #tpu.memory_space<vmem>>, vector<16x128xf32>,
    return
  }
  func.func @transform_0(%arg0: i32) -> (i32, i32) {
    %c0_i32 = arith.constant 0 : i32
    %c0_i32_0 = arith.constant 0 : i32
    return %arg0, %c0_i32 : i32, i32
  }
  func.func @transform_1(%arg0: i32) -> (i32, i32) {
    %c0_i32 = arith.constant 0 : i32
    %c0_i32_0 = arith.constant 0 : i32
    %c0_i32_1 = arith.constant 0 : i32
    return %c0_i32, %c0_i32_0 : i32, i32
  }
  func.func @transform_2(%arg0: i32) -> (i32, i32) {
    %c0_i32 = arith.constant 0 : i32
    %c0_i32_0 = arith.constant 0 : i32
    %c0_i32_1 = arith.constant 0 : i32
    return %c0_i32, %c0_i32_0 : i32, i32
  }
  func.func @transform_3(%arg0: i32) -> (i32, i32) {
    %c0_i32 = arith.constant 0 : i32
    %c0_i32_0 = arith.constant 0 : i32
    return %arg0, %c0_i32 : i32, i32
  }
}

</mosaic_0001>

<bundles_post_ra>
// kernel: tpu_custom_call.1
= control target key start
LH: loop header
LB: loop body
LE: loop exit
PB: predicated region body
PF: predicated region fallthrough
CT: control target
= control target key end

     0   :  { %8 = vsyncpa [#allocation3], 0  ;;  %s204_s0 = inlined_call_operand.hbm [shape: f32[16,128], index: 0, kind: input, shape index: {}]   ;;  %s205_s1 = inlined_call_operand.vmem [shape: f32[1,128], index: 1, kind: input, shape index: {}]   ;;  %s206_s2 = inlined_call_operand.vmem [shape: f32[1,128], index: 2, kind: input, shape index: {}]   ;;  %s207_s3 = inlined_call_operand.hbm [shape: f32[16,128], index: 3, kind: output, shape index: {}]  }
   0x1   :  { %9 = vsyncpa [#allocation4], 0  ;;  %s162_s12 = smov [#allocation2]  }
   0x2   :  { %s15_s13 = sshll.u32 %s162_s12, 4  ;;  %s16_s13 = int_to_ptr.vmem [resolvable:$true] %s15_s13 }
   0x3   :  { %s126_s14 = scalar_lea.vmem %s16_s13, 256  ;;  %p131_p1 = scmp.lt.s32.totalorder %s16_s13, %s16_s13 }
   0x4   :  { %p127_p0 = scmp.ne.s32.totalorder %s16_s13, %s126_s14  ;;  %p132_p2 = scmp.lt.s32.totalorder %s126_s14, %s126_s14 }
   0x6   :  { %p133_p3 = por %p132_p2, %p131_p1 }
   0x8   :  { %p134_p4 = pnand %p133_p3, %p127_p0 }
   0xa   :  { %137 = shalt.err (!%p134_p4)
}
   0xb   :  { %s163_s15 = smov 128   ;;  %s164_s16 = smov 8  }
   0xc   :  { %21 = dma.hbm_to_vmem [thread:$0]  %s204_s0, 256, %s16_s13, [#allocation3], %s163_s15, %s163_s15, %s164_s16  }
   0xd   :  { %158 = dma.done.wait [#allocation3], 256  }
   0xe   :  { %159 = vsyncadd [#allocation3], 4294967040  ;;  %v29_v0 = vld [vmem:[#allocation2] sm:$0xff]  ;;  %v30_v1 = vld [vmem:[#allocation2 + $0x8] sm:$0xff]  ;;  %s165_s22 = smov [#allocation5]  }
   0xf   :  { %31 = vadd.xlane.f32.xlu0 %v29_v0  ;;  %v104_v27 = vld [vmem:[%s205_s1] ss:$0 sm:$0xff]  ;;  %s92_s23 = sshll.u32 %s165_s22, 4  ;;  %s93_s23 = int_to_ptr.vmem [resolvable:$true] %s92_s23 }
  0x10   :  { %v105_v29 = vld [vmem:[%s206_s2] ss:$0 sm:$0xff]  ;;  %s138_s24 = scalar_lea.vmem %s93_s23, 256  ;;  %p143_p6 = scmp.lt.s32.totalorder %s93_s23, %s93_s23 }
  0x11   :  { %p139_p5 = scmp.ne.s32.totalorder %s93_s23, %s138_s24  ;;  %p144_p7 = scmp.lt.s32.totalorder %s138_s24, %s138_s24 }
  0x13   :  { %33 = vadd.xlane.f32.xlu0 %v30_v1  ;;  %p145_p8 = por %p144_p7, %p143_p6 }
  0x15   :  { %p146_p9 = pnand %p145_p8, %p139_p5 }
  0x98   :  { %v32_v2 = vpop.xlane.xlu0 %31 }
  0x99   :  { %v35_v3 = vmul.f32 0.0078125, %v32_v2 }
  0x9b   :  { %v37_v4 = vsub.f32 %v29_v0, %v35_v3 }
  0x9c   :  { %v34_v5 = vpop.xlane.xlu0 %33 }
  0x9d   :  { %v36_v6 = vmul.f32 0.0078125, %v34_v5  ;;  %v39_v7 = vmul.f32 %v37_v4, %v37_v4 }
  0x9f   :  { %v38_v8 = vsub.f32 %v30_v1, %v36_v6  ;;  %41 = vadd.xlane.f32.xlu1 %v39_v7 }
  0xa1   :  { %v40_v9 = vmul.f32 %v38_v8, %v38_v8 }
  0xa3   :  { %43 = vadd.xlane.f32.xlu1 %v40_v9 }
 0x128   :  { %v42_v10 = vpop.xlane.xlu1 %41 }
 0x129   :  { %v45_v11 = vmul.f32 0.007874016, %v42_v10 }
 0x12b   :  { %110 = vrsqrt.f32 %v45_v11  ;;  %vm49_vm0 = vcmp.eq.f32.partialorder %v45_v11, inf  ;;  %v52_v16 = vand.u32 2147483648, %v45_v11  ;;  %vm51_vm1 = vcmp.eq.f32.partialorder %v45_v11, 0.0 }
 0x12c   :  { %v44_v12 = vpop.xlane.xlu1 %43 }
 0x12d   :  { %v46_v13 = vmul.f32 0.007874016, %v44_v12 }
 0x12f   :  { %112 = vrsqrt.f32 %v46_v13  ;;  %vm56_vm2 = vcmp.eq.f32.partialorder %v46_v13, inf  ;;  %v59_v22 = vand.u32 2147483648, %v46_v13  ;;  %vm58_vm3 = vcmp.eq.f32.partialorder %v46_v13, 0.0 }
 0x138   :  { %v111_v14 = vpop.eup %110 }
 0x139   :  { %v48_v15 = vmul.f32 %v111_v14, %v45_v11 }
 0x13b   :  { %v50_v17 = vsel %vm49_vm0, %v45_v11, %v48_v15 }
 0x13c   :  { %v113_v18 = vpop.eup %112  ;;  %v53_v19 = vsel %vm51_vm1, %v52_v16, %v50_v17 }
 0x13d   :  { %v61_v20 = vadd.f32 1e-06, %v53_v19  ;;  %v55_v21 = vmul.f32 %v113_v18, %v46_v13 }
 0x13f   :  { %114 = vrcp.f32 %v61_v20  ;;  %v57_v23 = vsel %vm56_vm2, %v46_v13, %v55_v21 }
 0x140   :  { %v60_v24 = vsel %vm58_vm3, %v59_v22, %v57_v23 }
 0x141   :  { %v62_v25 = vadd.f32 1e-06, %v60_v24 }
 0x143   :  { %116 = vrcp.f32 %v62_v25 }
 0x14c   :  { %v115_v26 = vpop.eup %114 }
 0x14d   :  { %v66_v28 = vmul.f32 %v115_v26, %v37_v4 }
 0x14f   :  { %v74_v30 = vmul.f32 %v104_v27, %v66_v28 }
 0x150   :  { %v117_v31 = vpop.eup %116 }
 0x151   :  { %v67_v32 = vmul.f32 %v117_v31, %v38_v8  ;;  %v83_v33 = vadd.f32 %v105_v29, %v74_v30 }
 0x153   :  { %v75_v34 = vmul.f32 %v104_v27, %v67_v32  ;;  %85 = vst [vmem:[#allocation5] sm:$0xff] %v83_v33 }
 0x155   :  { %v84_v35 = vadd.f32 %v105_v29, %v75_v34 }
 0x157   :  { %86 = vst [vmem:[#allocation5 + $0x8] sm:$0xff] %v84_v35 }
 0x158   :  { %149 = shalt.err (!%p146_p9)
}
 0x159   :  { %98 = dma.vmem_to_hbm [thread:$0]  %s93_s23, 256, %s207_s3, [#allocation4], %s163_s15, %s163_s15, %s164_s16  }
 0x15a   :  { %160 = dma.done.wait [#allocation4], 256  }
 0x15b   :  { %161 = vsyncadd [#allocation4], 4294967040 }
 0x15c   :  { %102 = vsyncpa [#allocation3], 1 }
 0x15d   :  { %103 = vsyncpa [#allocation4], 1 }

</bundles_post_ra>
